<compile_context>
chip_gen: v7x
topology: tpu7x:2x2x1
jax: 0.10.0
libtpu: 0.0.40
codegen_flags: <defaults>
</compile_context>

<pallas_src>
import functools

import jax
import jax.numpy as jnp
from jax.experimental import pallas as pl
from jax.experimental.pallas import tpu as pltpu

_LANE = 128
_SUBLANE = 8
_VREG = _SUBLANE * _LANE  # 1024 elements


def _soft_dice_kernel(logits_ref, targets_ref, inter_ref, card_ref, *,
                      rows, tile_rows):
    """One grid step = one (1, tile_rows, 128) slab of one sample."""
    s = pl.program_id(1)

    # Init per-sample accumulators on the first spatial step.
    @pl.when(s == 0)
    def _():
        inter_ref[...] = jnp.zeros_like(inter_ref)
        card_ref[...] = jnp.zeros_like(card_ref)

    # Narrow streaming dtypes allowed; all math in f32 (v5e has no bf16 VPU/EUP).
    x = logits_ref[0].astype(jnp.float32)      # (tile_rows, 128)
    t = targets_ref[0].astype(jnp.float32)
    probs = jax.nn.sigmoid(x)

    # Ragged tail: last spatial tile may extend past `rows`; zero garbage rows.
    if rows % tile_rows != 0:
        row0 = s * tile_rows
        ridx = jax.lax.broadcasted_iota(jnp.int32, (tile_rows, _LANE), 0)
        valid = (row0 + ridx) < rows
        probs = jnp.where(valid, probs, 0.0)
        t = jnp.where(valid, t, 0.0)

    prod = probs * t        # intersection terms
    ssum = probs + t        # cardinality terms

    # Collapse the row tile down to a single (8, 128) vreg using pure VPU adds
    # (the reshape matches vreg boundaries, so no data movement). The final
    # cross-lane/sublane reduce happens once, in the wrapper, on (B, 8, 128).
    k = tile_rows // _SUBLANE
    if k > 1:
        prod = jnp.sum(prod.reshape(k, _SUBLANE, _LANE), axis=0)
        ssum = jnp.sum(ssum.reshape(k, _SUBLANE, _LANE), axis=0)

    inter_ref[0] += prod
    card_ref[0] += ssum


def soft_dice_loss(logits, targets, eps: float = 1e-6, *, max_tile_rows: int = 2048):
    """Pallas implementation of SoftDiceLoss.forward (returns a scalar)."""
    assert logits.shape == targets.shape
    assert logits.ndim >= 2
    B = logits.shape[0]
    N = 1
    for d in logits.shape[1:]:
        N *= d

    # Glue: flatten per-sample dims; pad to a (8*128)-element boundary so the
    # (rows, 128) view always has rows % 8 == 0.  Pad values contribute exactly
    # zero to both sums: sigmoid(-1e9) == 0 and target == 0.
    n_pad = -(-N // _VREG) * _VREG
    x = logits.reshape(B, N)
    t = targets.reshape(B, N)
    if n_pad != N:
        x = jnp.pad(x, ((0, 0), (0, n_pad - N)), constant_values=-1e9)
        t = jnp.pad(t, ((0, 0), (0, n_pad - N)), constant_values=0)
    rows = n_pad // _LANE
    x = x.reshape(B, rows, _LANE)
    t = t.reshape(B, rows, _LANE)

    # Spatial tile: multiple of 8 sublanes, capped so 2 inputs x 2 pipeline
    # buffers stay ~4 MiB at the default (fits scoped VMEM on v5e/v6e/v7x).
    max_tile_rows = max(_SUBLANE, (max_tile_rows // _SUBLANE) * _SUBLANE)
    tile_rows = min(rows, max_tile_rows)
    s_tiles = pl.cdiv(rows, tile_rows)

    kernel = functools.partial(_soft_dice_kernel, rows=rows, tile_rows=tile_rows)

    # NOTE: if profiling shows exposed DMA between steps, in_specs can take
    # pipeline_mode=pl.Buffered(3) for a deeper pipeline (one extra tile of VMEM).
    inter, card = pl.pallas_call(
        kernel,
        out_shape=(
            jax.ShapeDtypeStruct((B, _SUBLANE, _LANE), jnp.float32),
            jax.ShapeDtypeStruct((B, _SUBLANE, _LANE), jnp.float32),
        ),
        grid_spec=pltpu.PrefetchScalarGridSpec(
            num_scalar_prefetch=0,
            grid=(B, s_tiles),
            in_specs=[
                pl.BlockSpec((1, tile_rows, _LANE), lambda b, s: (b, s, 0)),
                pl.BlockSpec((1, tile_rows, _LANE), lambda b, s: (b, s, 0)),
            ],
            out_specs=[
                pl.BlockSpec((1, _SUBLANE, _LANE), lambda b, s: (b, 0, 0)),
                pl.BlockSpec((1, _SUBLANE, _LANE), lambda b, s: (b, 0, 0)),
            ],
        ),
        compiler_params=pltpu.CompilerParams(
            # Per-sample outputs -> batch axis is race-free and can be
            # megacore-sharded on v7x; spatial axis is the reduction.
            dimension_semantics=("parallel", "arbitrary"),
        ),
    )(x, t)

    # Tiny epilogue in plain JAX: collapse (B, 8, 128) partials, dice, mean.
    inter = jnp.sum(inter, axis=(1, 2))
    card = jnp.sum(card, axis=(1, 2))
    dice = (2.0 * inter + eps) / (card + eps)
    return 1.0 - jnp.mean(dice)


def soft_dice_loss_ref(logits, targets, eps: float = 1e-6):
    """Plain-JAX reference mirroring the PyTorch module."""
    probs = jax.nn.sigmoid(logits.astype(jnp.float32))
    t = targets.astype(jnp.float32)
    dims = tuple(range(1, probs.ndim))
    intersection = jnp.sum(probs * t, axis=dims)
    cardinality = jnp.sum(probs + t, axis=dims)
    dice = (2.0 * intersection + eps) / (cardinality + eps)
    return 1.0 - jnp.mean(dice)


if __name__ == "__main__":
    key = jax.random.PRNGKey(0)
    k1, k2, k3, k4, k5, k6 = jax.random.split(key, 6)

    # 1) f32 logits / f32 binary targets (matches the PyTorch module exactly).
    B, C, H, W = 2, 4, 16, 16
    logits = jax.random.normal(k1, (B, C, H, W), dtype=jnp.float32)
    targets = (jax.random.uniform(k2, (B, C, H, W)) > 0.5).astype(jnp.float32)
    out = jax.block_until_ready(soft_dice_loss(logits, targets))
    ref = soft_dice_loss_ref(logits, targets)
    assert jnp.allclose(out, ref, atol=1e-5, rtol=1e-5), (out, ref)

    # 2) Bandwidth-optimized streaming dtypes: bf16 logits + int8 targets.
    out_lp = jax.block_until_ready(
        soft_dice_loss(logits.astype(jnp.bfloat16), targets.astype(jnp.int8)))
    ref_lp = soft_dice_loss_ref(logits.astype(jnp.bfloat16),
                                targets.astype(jnp.int8))
    assert jnp.allclose(out_lp, ref_lp, atol=1e-5, rtol=1e-5), (out_lp, ref_lp)

    # 3) Ragged spatial tail (rows % tile_rows != 0): exercises in-kernel masking.
    l3 = jax.random.normal(k3, (2, 3, 32, 32), dtype=jnp.float32)
    t3 = (jax.random.uniform(k4, (2, 3, 32, 32)) > 0.5).astype(jnp.float32)
    out3 = jax.block_until_ready(soft_dice_loss(l3, t3, max_tile_rows=16))
    ref3 = soft_dice_loss_ref(l3, t3)
    assert jnp.allclose(out3, ref3, atol=1e-5, rtol=1e-5), (out3, ref3)

    # 4) Spatial size not a multiple of 1024: exercises the wrapper pad path.
    l4 = jax.random.normal(k5, (2, 3, 16, 16), dtype=jnp.float32)
    t4 = (jax.random.uniform(k6, (2, 3, 16, 16)) > 0.5).astype(jnp.float32)
    out4 = jax.block_until_ready(soft_dice_loss(l4, t4))
    ref4 = soft_dice_loss_ref(l4, t4)
    assert jnp.allclose(out4, ref4, atol=1e-5, rtol=1e-5), (out4, ref4)

    print("KERNEL_OK")
</pallas_src>

<mosaic_0001>
module attributes {stable_mosaic.version = 11 : i64} {
  func.func @_soft_dice_kernel(%arg0: i32, %arg1: i32, %arg2: memref<1x8x128xf32, #tpu.memory_space<vmem>>, %arg3: memref<1x8x128xf32, #tpu.memory_space<vmem>>, %arg4: memref<1x8x128xf32, #tpu.memory_space<vmem>>, %arg5: memref<1x8x128xf32, #tpu.memory_space<vmem>>) attributes {dimension_semantics = [#tpu.dimension_semantics<parallel>, #tpu.dimension_semantics<arbitrary>], iteration_bounds = array<i64: 2, 1>, scalar_prefetch = 0 : i64, scratch_operands = 0 : i64, tpu.core_type = #tpu.core_type<tc>, window_params = [{transform_indices = @transform_0, window_bounds = array<i64: 1, 8, 128>}, {transform_indices = @transform_1, window_bounds = array<i64: 1, 8, 128>}, {transform_indices = @transform_2, window_bounds = array<i64: 1, 8, 128>}, {transform_indices = @transform_3, window_bounds = array<i64: 1, 8, 128>}]} {
    %c0_i32 = arith.constant 0 : i32
    %0 = arith.cmpi eq, %arg1, %c0_i32 : i32
    %1 = arith.extui %0 : i1 to i32
    %c0_i32_0 = arith.constant 0 : i32
    %2 = arith.cmpi ne, %1, %c0_i32_0 : i32
    scf.if %2 {
      %cst_18 = arith.constant 0.000000e+00 : f32
      %26 = vector.broadcast %cst_18 : f32 to vector<1x8x128xf32>
      %c0_19 = arith.constant 0 : index
      %c0_20 = arith.constant 0 : index
      %c0_21 = arith.constant 0 : index
      %27 = vector.load %arg4[%c0_19, %c0_20, %c0_21] : memref<1x8x128xf32, #tpu.memory_space<vmem>>, vector<1x8x128xf32>
      tpu.vector_store %arg4[%c0_19, %c0_20, %c0_21], %26 {strides = array<i32>} : memref<1x8x128xf32, #tpu.memory_space<vmem>>, vector<1x8x128xf32>,
      %cst_22 = arith.constant 0.000000e+00 : f32
      %28 = vector.broadcast %cst_22 : f32 to vector<1x8x128xf32>
      %c0_23 = arith.constant 0 : index
      %c0_24 = arith.constant 0 : index
      %c0_25 = arith.constant 0 : index
      %29 = vector.load %arg5[%c0_23, %c0_24, %c0_25] : memref<1x8x128xf32, #tpu.memory_space<vmem>>, vector<1x8x128xf32>
      tpu.vector_store %arg5[%c0_23, %c0_24, %c0_25], %28 {strides = array<i32>} : memref<1x8x128xf32, #tpu.memory_space<vmem>>, vector<1x8x128xf32>,
    } else {
    }
    %c0 = arith.constant 0 : index
    %c0_1 = arith.constant 0 : index
    %c0_2 = arith.constant 0 : index
    %3 = vector.load %arg2[%c0, %c0_1, %c0_2] : memref<1x8x128xf32, #tpu.memory_space<vmem>>, vector<1x8x128xf32>
    %4 = vector.shape_cast %3 : vector<1x8x128xf32> to vector<8x128xf32>
    %c0_3 = arith.constant 0 : index
    %c0_4 = arith.constant 0 : index
    %c0_5 = arith.constant 0 : index
    %5 = vector.load %arg3[%c0_3, %c0_4, %c0_5] : memref<1x8x128xf32, #tpu.memory_space<vmem>>, vector<1x8x128xf32>
    %6 = vector.shape_cast %5 : vector<1x8x128xf32> to vector<8x128xf32>
    %7 = arith.negf %4 : vector<8x128xf32>
    %8 = math.exp %7 : vector<8x128xf32>
    %cst = arith.constant 1.000000e+00 : f32
    %9 = vector.broadcast %cst : f32 to vector<8x128xf32>
    %10 = arith.addf %9, %8 : vector<8x128xf32>
    %11 = arith.divf %9, %10 : vector<8x128xf32>
    %12 = arith.mulf %11, %6 : vector<8x128xf32>
    %13 = arith.addf %11, %6 : vector<8x128xf32>
    %c0_6 = arith.constant 0 : index
    %c0_7 = arith.constant 0 : index
    %c0_8 = arith.constant 0 : index
    %14 = vector.load %arg4[%c0_6, %c0_7, %c0_8] : memref<1x8x128xf32, #tpu.memory_space<vmem>>, vector<1x8x128xf32>
    %15 = vector.shape_cast %14 : vector<1x8x128xf32> to vector<8x128xf32>
    %16 = arith.addf %15, %12 : vector<8x128xf32>
    %c0_9 = arith.constant 0 : index
    %c0_10 = arith.constant 0 : index
    %c0_11 = arith.constant 0 : index
    %17 = vector.load %arg4[%c0_9, %c0_10, %c0_11] : memref<1x8x128xf32, #tpu.memory_space<vmem>>, vector<1x8x128xf32>
    %18 = vector.shape_cast %17 : vector<1x8x128xf32> to vector<8x128xf32>
    %19 = vector.shape_cast %16 : vector<8x128xf32> to vector<1x8x128xf32>
    tpu.vector_store %arg4[%c0_9, %c0_10, %c0_11], %19 {strides = array<i32>} : memref<1x8x128xf32, #tpu.memory_space<vmem>>, vector<1x8x128xf32>,
    %c0_12 = arith.constant 0 : index
    %c0_13 = arith.constant 0 : index
    %c0_14 = arith.constant 0 : index
    %20 = vector.load %arg5[%c0_12, %c0_13, %c0_14] : memref<1x8x128xf32, #tpu.memory_space<vmem>>, vector<1x8x128xf32>
    %21 = vector.shape_cast %20 : vector<1x8x128xf32> to vector<8x128xf32>
    %22 = arith.addf %21, %13 : vector<8x128xf32>
    %c0_15 = arith.constant 0 : index
    %c0_16 = arith.constant 0 : index
    %c0_17 = arith.constant 0 : index
    %23 = vector.load %arg5[%c0_15, %c0_16, %c0_17] : memref<1x8x128xf32, #tpu.memory_space<vmem>>, vector<1x8x128xf32>
    %24 = vector.shape_cast %23 : vector<1x8x128xf32> to vector<8x128xf32>
    %25 = vector.shape_cast %22 : vector<8x128xf32> to vector<1x8x128xf32>
    tpu.vector_store %arg5[%c0_15, %c0_16, %c0_17], %25 {strides = array<i32>} : memref<1x8x128xf32, #tpu.memory_space<vmem>>, vector<1x8x128xf32>,
    return
  }
  func.func @transform_0(%arg0: i32, %arg1: i32) -> (i32, i32, i32) {
    %c0_i32 = arith.constant 0 : i32
    %c0_i32_0 = arith.constant 0 : i32
    return %arg0, %arg1, %c0_i32 : i32, i32, i32
  }
  func.func @transform_1(%arg0: i32, %arg1: i32) -> (i32, i32, i32) {
    %c0_i32 = arith.constant 0 : i32
    %c0_i32_0 = arith.constant 0 : i32
    return %arg0, %arg1, %c0_i32 : i32, i32, i32
  }
  func.func @transform_2(%arg0: i32, %arg1: i32) -> (i32, i32, i32) {
    %c0_i32 = arith.constant 0 : i32
    %c0_i32_0 = arith.constant 0 : i32
    %c0_i32_1 = arith.constant 0 : i32
    return %arg0, %c0_i32, %c0_i32_0 : i32, i32, i32
  }
  func.func @transform_3(%arg0: i32, %arg1: i32) -> (i32, i32, i32) {
    %c0_i32 = arith.constant 0 : i32
    %c0_i32_0 = arith.constant 0 : i32
    %c0_i32_1 = arith.constant 0 : i32
    return %arg0, %c0_i32, %c0_i32_0 : i32, i32, i32
  }
}

</mosaic_0001>

<bundles_post_ra>
// kernel: tpu_custom_call.1
= control target key start
LH: loop header
LB: loop body
LE: loop exit
PB: predicated region body
PF: predicated region fallthrough
CT: control target
= control target key end

     0   :  { %9 = vsyncpa [#allocation3], 0  ;;  %s997_s0 = inlined_call_operand.hbm [shape: f32[2,8,128], index: 0, kind: input, shape index: {}]   ;;  %s998_s1 = inlined_call_operand.hbm [shape: f32[2,8,128], index: 1, kind: input, shape index: {}]   ;;  %s999_s2 = inlined_call_operand.hbm [shape: f32[2,8,128], index: 2, kind: output, shape index: {0}]   ;;  %s1000_s3 = inlined_call_operand.hbm [shape: f32[2,8,128], index: 3, kind: output, shape index: {1}]  }
   0x1   :  { %11 = vsyncpa [#allocation3 + $0x1], 0 }
   0x2   :  { %12 = vsyncpa [#allocation6], 0 }
   0x3   :  { %14 = vsyncpa [#allocation6 + $0x1], 0 }
   0x4   :  { %15 = vsyncpa [#allocation4], 0 }
   0x5   :  { %17 = vsyncpa [#allocation4 + $0x1], 0 }
   0x6   :  { %18 = vsyncpa [#allocation9], 0 }
   0x7   :  { %20 = vsyncpa [#allocation9 + $0x1], 0  ;;  %s742_s12 = smov 0   ;;  %s744_s13 = smov 0  }
   0x8   :  { %s746_s14 = smov 0   ;;  %s748_s15 = smov 0  }
   0x9   :  { %s750_s16 = smov 0   ;;  %s752_s17 = smov 0  }
   0xa LB: > { %s441_s18 = sadd.s32 4294967295, %s716_s17   ;;  %s442_s19 = sadd.s32 4294967294, %s716_s17   ;;  %s716_s17 = sphi %s752_s17, %s26_s17   ;;  %s712_s16 = sphi %s750_s16, %s1020_s16   ;;  %s708_s15 = sphi %s748_s15, %s1019_s15   ;;  %s704_s14 = sphi %s746_s14, %s1018_s14   ;;  %s700_s13 = sphi %s744_s13, %s1017_s13   ;;  %s696_s12 = sphi %s742_s12, %s1016_s12  }
   0xb   : > { %s38_s20 = sadd.s32 1, %s712_s16  ;;  %s47_s21 = sadd.s32 1, %s704_s14 }
   0xc   : > { %p40_p0 = scmp.ge.s32.totalorder %s38_s20, 2  ;;  %p54_p1 = scmp.ne.s32.totalorder %s704_s14, %s700_s13 }
   0xd   : > { %p55_p2 = scmp.eq.s32.totalorder %s716_s17, 0  ;;  %p60_p3 = scmp.ne.s32.totalorder %s700_s13, %s696_s12 }
   0xe   : > { %s1022_s20 = smov (%p40_p0, %s38_s20), 0  ;;  %p61_p5 = scmp.eq.s32.totalorder %s441_s18, 0 }
   0xf   : > { %p783_p4 = por %p55_p2, %p54_p1  ;;  %s42_s23 = ssub.s32 %s712_s16, %s1022_s20 }
  0x10   : > { %p112_p6 = scmp.eq.s32.totalorder %s441_s18, 1  ;;  %p45_p7 = scmp.eq.s32.totalorder %s42_s23, 0 }
  0x11   : > { %p789_p8 = por %p61_p5, %p60_p3  ;;  %p118_p10 = scmp.eq.s32.totalorder %s442_s19, 1 }
  0x12   : > { %p793_p9 = por %p112_p6, %p54_p1  ;;  %p483_p13 = scmp.lt.s32.totalorder %s716_s17, 2 }
  0x13   : > { %s1004_s24 = scalar_select %p789_p8, 1, 0 }
  0x14   : > { %s1005_s25 = scalar_select %p793_p9, 1, 0 }
  0x15   : > { %s798_s26 = scalar_select %p45_p7, %s704_s14, %s47_s21  }
  0x16   : > { %p800_p11 = por %p118_p10, %p60_p3  ;;  %s807_s28 = sand.u32 1, %s704_s14  }
  0x17   : > { %s445_s29 = sshll.u32 %s807_s28, 3  ;;  %s446_s30 = sshll.u32 %s712_s16, 7 }
  0x18   : > { %s1006_s27 = scalar_select %p800_p11, 1, 0 }
  0x19   : > { %s816_s6 = scalar_lea.hbm %s997_s0, %s446_s30  ;;  %s168_s7 = scalar_lea.vmem [#allocation2], %s445_s29 }
  0x1a   : > { %s176_s8 = sshll.u32 %s168_s7, 4  ;;  %p824_p0 = pnand %p483_p13, %p783_p4  ;;  %s820_s8 = int_to_ptr.vmem [resolvable:$true] %s176_s8 }
  0x1b   : > { %s165_s10 = scalar_lea.sflag [#allocation3], %s807_s28  ;;  %s538_s11 = scalar_lea.hbm %s816_s6, 128 }
  0x1c   : > { %p539_p3 = scmp.ne.s32.totalorder %s816_s6, %s538_s11  ;;  %p540_p5 = pneg %p824_p0 }
  0x1d   : > { %s543_s21 = scalar_lea.hbm %s997_s0, 256  ;;  %p544_p4 = scmp.lt.u32.totalorder %s816_s6, %s997_s0 }
  0x1e   : > { %p541_p6 = pnand %p540_p5, %p539_p3  ;;  %p545_p10 = scmp.lt.u32.totalorder %s543_s21, %s538_s11 }
  0x1f   : > { %p547_p12 = scmp.lt.u32.totalorder %s538_s11, %s816_s6 }
  0x20   : > { %p542_p7 = pneg %p541_p6  ;;  %p546_p13 = por %p545_p10, %p544_p4 }
  0x22   : > { %p548_p1 = por %p547_p12, %p546_p13 }
  0x24   : > { %p549_p2 = pnand %p548_p1, %p542_p7 }
  0x26   : > { %552 = shalt.err (!%p549_p2)
}
  0x27   : > { %s553_s4 = scalar_lea.vmem %s820_s8, 128  ;;  %s718_s5 = smov [#allocation2]  }
  0x28   : > { %p554_p3 = scmp.ne.s32.totalorder %s820_s8, %s553_s4  ;;  %s558_s7 = sshll.u32 %s718_s5, 4  ;;  %s559_s7 = int_to_ptr.vmem [resolvable:$false] %s558_s7 }
  0x29   : > { %s560_s18 = scalar_lea.vmem %s559_s7, 256  ;;  %p561_p9 = scmp.lt.s32.totalorder %s820_s8, %s559_s7 }
  0x2a   : > { %p556_p6 = pnand %p554_p3, %p540_p5  ;;  %p562_p4 = scmp.lt.s32.totalorder %s560_s18, %s553_s4 }
  0x2c   : > { %p557_p11 = pneg %p556_p6  ;;  %p563_p10 = por %p562_p4, %p561_p9 }
  0x2e   : > { %p564_p12 = pnand %p563_p10, %p557_p11 }
  0x30   : > { %567 = shalt.err (!%p564_p12)
}
  0x31   : > { %472 = dma.hbm_to_vmem [thread:$0]  (!%p824_p0), %s816_s6, 128, %s820_s8, %s165_s10  }
  0x32   : > { %p1008_p1 = scmp.lt.s32.totalorder %s716_s17, 3  ;;  %p1009_p2 = scmp.ge.s32.totalorder %s716_s17, 1 }
  0x33   : > { %s869_s22 = scalar_lea.hbm %s998_s1, %s446_s30  ;;  %s187_s23 = scalar_lea.vmem [#allocation5], %s445_s29 }
  0x34   : > { %p860_p7 = pnand %p1009_p2, %p1008_p1  ;;  %s195_s4 = sshll.u32 %s187_s23, 4  ;;  %s196_s4 = int_to_ptr.vmem [resolvable:$true] %s195_s4 }
  0x35   : > { %s184_s6 = scalar_lea.sflag [#allocation6], %s807_s28  ;;  %s568_s8 = scalar_lea.hbm %s869_s22, 128 }
  0x36   : > { %s1010_s11 = scalar_select %p860_p7, 1, 0 }
  0x37   : > { %p569_p9 = scmp.ne.s32.totalorder %s869_s22, %s568_s8  ;;  %s573_s30 = scalar_lea.hbm %s998_s1, 256 }
  0x38   : > { %p574_p3 = scmp.lt.u32.totalorder %s869_s22, %s998_s1  ;;  %p575_p6 = scmp.lt.u32.totalorder %s573_s30, %s568_s8 }
  0x39   : > { %p571_p11 = pnand %p569_p9, %p540_p5  ;;  %p577_p10 = scmp.lt.u32.totalorder %s568_s8, %s869_s22 }
  0x3a   : > { %p576_p4 = por %p575_p6, %p574_p3 }
  0x3b   : > { %p572_p13 = pneg %p571_p11 }
  0x3c   : > { %p578_p12 = por %p577_p10, %p576_p4 }
  0x3e   : > { %p579_p1 = pnand %p578_p12, %p572_p13 }
  0x40   : > { %582 = shalt.err (!%p579_p1)
}
  0x41   : > { %s583_s28 = scalar_lea.vmem %s196_s4, 128  ;;  %s719_s29 = smov [#allocation5]  }
  0x42   : > { %p584_p2 = scmp.ne.s32.totalorder %s196_s4, %s583_s28  ;;  %s588_s19 = sshll.u32 %s719_s29, 4  ;;  %s589_s19 = int_to_ptr.vmem [resolvable:$false] %s588_s19 }
  0x43   : > { %s590_s21 = scalar_lea.vmem %s589_s19, 256  ;;  %p591_p8 = scmp.lt.s32.totalorder %s196_s4, %s589_s19 }
  0x44   : > { %p586_p9 = pnand %p584_p2, %p540_p5  ;;  %p592_p7 = scmp.lt.s32.totalorder %s590_s21, %s583_s28 }
  0x46   : > { %p587_p11 = pneg %p586_p9  ;;  %p593_p3 = por %p592_p7, %p591_p8 }
  0x48   : > { %p594_p6 = pnand %p593_p3, %p587_p11 }
  0x4a   : > { %597 = shalt.err (!%p594_p6)
}
  0x4b   : > { %475 = dma.hbm_to_vmem [thread:$0]  (!%p824_p0), %s869_s22, 128, %s196_s4, %s184_s6  }
  0x4c   : > { %p1011_p13 = scmp.ne.s32.totalorder %s1010_s11, 0 }
  0x4d   : > { %s896_s23 = sand.u32 (!%p1011_p13), 1, %s700_s13   ;;  %p1012_p8 = scmp.ne.s32.totalorder (!%p1011_p13), %s1004_s24, 0 }
  0x4e   : > { %204 = sbr.rel (%p1011_p13) target bundleno = 154 (0x9a), region = 28  ;;  %s899_s8 = sshll.u32 (!%p1011_p13), %s896_s23, 3 }
  0x4f   : > { %s207_s10 = scalar_lea.sflag (!%p1011_p13), [#allocation3], %s896_s23  ;;  %s210_s5 = scalar_lea.vmem (!%p1011_p13), [#allocation2], %s899_s8 }
  0x55   : > { %679 = dma.done.wait (%p1012_p8), %s207_s10, 128  }
  0x56   : > { %681 = vsyncadd (%p1012_p8), %s207_s10, 4294967168  ;;  %s216_s9 = scalar_lea.sflag [#allocation6], %s896_s23  ;;  %s219_s11 = scalar_lea.vmem [#allocation5], %s899_s8 }
  0x57   : > { %683 = dma.done.wait (%p1012_p8), %s216_s9, 128  }
  0x58   : > { %685 = vsyncadd (%p1012_p8), %s216_s9, 4294967168  ;;  %v258_v0 = vld [vmem:[%s210_s5] sm:$0xff]  ;;  %v259_v4 = vld [vmem:[%s219_s11] sm:$0xff]  ;;  %s457_s22 = sshll.u32 %s708_s15, 7  ;;  %s244_s4 = scalar_lea.vmem [#allocation7], %s899_s8 }
  0x59   : > { %v454_v1 = vmul.f32 -1.442695, %v258_v0  ;;  %s293_s6 = sshll.u32 %s244_s4, 4  ;;  %s251_s24 = scalar_lea.vmem [#allocation8], %s899_s8  ;;  %s921_s6 = int_to_ptr.vmem [resolvable:$true] %s293_s6 }
  0x5a   : > { %s306_s30 = sshll.u32 %s251_s24, 4  ;;  %s919_s28 = scalar_lea.hbm %s999_s2, %s457_s22  ;;  %s928_s30 = int_to_ptr.vmem [resolvable:$true] %s306_s30 }
  0x5b   : > { %534 = vpow2.f32 %v454_v1  ;;  %s926_s15 = scalar_lea.hbm %s1000_s3, %s457_s22  ;;  %s275_s21 = scalar_lea.sflag [#allocation4], %s896_s23 }
  0x5c   : > { %s598_s8 = scalar_lea.vmem %s921_s6, 128  ;;  %p1013_p5 = scmp.ne.s32.totalorder %s1005_s25, 0 }
  0x5d   : > { %p599_p0 = scmp.ne.s32.totalorder %s921_s6, %s598_s8  ;;  %s720_s10 = smov [#allocation7]  }
  0x5e   : > { %s602_s5 = sshll.u32 %s720_s10, 4  ;;  %s603_s5 = int_to_ptr.vmem [resolvable:$false] %s602_s5 }
  0x5f   : > { %p600_p7 = pnand %p599_p0, %p1013_p5  ;;  %s604_s9 = scalar_lea.vmem %s603_s5, 256 }
  0x60   : > { %p605_p10 = scmp.lt.s32.totalorder %s921_s6, %s603_s5  ;;  %p606_p12 = scmp.lt.s32.totalorder %s604_s9, %s598_s8 }
  0x61   : > { %p601_p4 = pneg %p600_p7 }
  0x62   : > { %p607_p1 = por %p606_p12, %p605_p10 }
  0x64   : > { %p608_p2 = pnand %p607_p1, %p601_p4 }
  0x65   : > { %v535_v2 = vpop.eup %534 }
  0x66   : > { %v263_v3 = vadd.f32 1.0, %v535_v2 }
  0x68   : > { %536 = vrcp.f32 %v263_v3 }
  0x72   : > { %v537_v5 = vpop.eup %536 }
  0x73   : > { %v266_v6 = vmul.f32 %v537_v5, %v259_v4  ;;  %v267_v7 = vadd.f32 %v537_v5, %v259_v4 }
  0x75   : > { %270 = vst [vmem:[%s244_s4] sm:$0xff] %v266_v6  ;;  %273 = vst [vmem:[%s251_s24] sm:$0xff] %v267_v7 }
  0x76   : > { %611 = shalt.err (!%p608_p2)
}
  0x77   : > { %s612_s11 = scalar_lea.hbm %s919_s28, 128  ;;  %s616_s24 = scalar_lea.hbm %s999_s2, 256 }
  0x78   : > { %p613_p9 = scmp.ne.s32.totalorder %s919_s28, %s612_s11  ;;  %p617_p6 = scmp.lt.u32.totalorder %s919_s28, %s999_s2 }
  0x79   : > { %p618_p13 = scmp.lt.u32.totalorder %s616_s24, %s612_s11  ;;  %p620_p0 = scmp.lt.u32.totalorder %s612_s11, %s919_s28 }
  0x7a   : > { %p614_p11 = pnand %p613_p9, %p1013_p5 }
  0x7b   : > { %p619_p8 = por %p618_p13, %p617_p6 }
  0x7c   : > { %p615_p3 = pneg %p614_p11 }
  0x7d   : > { %p621_p7 = por %p620_p0, %p619_p8 }
  0x7f   : > { %p622_p4 = pnand %p621_p7, %p615_p3 }
  0x81   : > { %625 = shalt.err (!%p622_p4)
}
  0x82   : > { %465 = dma.vmem_to_hbm [thread:$0]  (%p1013_p5), %s921_s6, 128, %s919_s28, %s275_s21  }
  0x83   : > { %s280_s29 = scalar_lea.sflag [#allocation9], %s896_s23  ;;  %s626_s19 = scalar_lea.vmem %s928_s30, 128 }
  0x84   : > { %p627_p10 = scmp.ne.s32.totalorder %s928_s30, %s626_s19  ;;  %s721_s8 = smov [#allocation8]  }
  0x85   : > { %s630_s10 = sshll.u32 %s721_s8, 4  ;;  %s631_s10 = int_to_ptr.vmem [resolvable:$false] %s630_s10 }
  0x86   : > { %p628_p12 = pnand %p627_p10, %p1013_p5  ;;  %s632_s5 = scalar_lea.vmem %s631_s10, 256 }
  0x87   : > { %p633_p2 = scmp.lt.s32.totalorder %s928_s30, %s631_s10  ;;  %p634_p9 = scmp.lt.s32.totalorder %s632_s5, %s626_s19 }
  0x88   : > { %p629_p1 = pneg %p628_p12 }
  0x89   : > { %p635_p11 = por %p634_p9, %p633_p2 }
  0x8b   : > { %p636_p3 = pnand %p635_p11, %p629_p1 }
  0x8d   : > { %639 = shalt.err (!%p636_p3)
}
  0x8e   : > { %s640_s23 = scalar_lea.hbm %s926_s15, 128  ;;  %s644_s21 = scalar_lea.hbm %s1000_s3, 256 }
  0x8f   : > { %p641_p6 = scmp.ne.s32.totalorder %s926_s15, %s640_s23  ;;  %p645_p0 = scmp.lt.u32.totalorder %s926_s15, %s1000_s3 }
  0x90   : > { %p646_p7 = scmp.lt.u32.totalorder %s644_s21, %s640_s23  ;;  %p648_p10 = scmp.lt.u32.totalorder %s640_s23, %s926_s15 }
  0x91   : > { %p642_p13 = pnand %p641_p6, %p1013_p5 }
  0x92   : > { %p647_p4 = por %p646_p7, %p645_p0 }
  0x93   : > { %p643_p8 = pneg %p642_p13 }
  0x94   : > { %p649_p12 = por %p648_p10, %p647_p4 }
  0x96   : > { %p650_p1 = pnand %p649_p12, %p643_p8 }
  0x98   : > { %653 = shalt.err (!%p650_p1)
}
  0x99   : > { %466 = dma.vmem_to_hbm [thread:$0]  (%p1013_p5), %s928_s30, 128, %s926_s15, %s280_s29  }
  0x9a PF: > { %s318_s22 = sand.u32 1, %s696_s12   ;;  %p1014_p2 = scmp.ne.s32.totalorder %s1006_s27, 0 }
  0x9b   : > { %p1015_p9 = scmp.ge.s32.totalorder %s716_s17, 2  ;;  %s319_s4 = scalar_lea.sflag [#allocation4], %s318_s22 }
  0x9d   : > { %p477_p11 = pnand %p1015_p9, %p1014_p2 }
  0x9f   : > { %687 = dma.done.wait (!%p477_p11), %s319_s4, 128  }
  0xa0   : > { %689 = vsyncadd (!%p477_p11), %s319_s4, 4294967168  ;;  %s328_s24 = scalar_lea.sflag [#allocation9], %s318_s22 }
  0xa1   : > { %691 = dma.done.wait (!%p477_p11), %s328_s24, 128  }
  0xa2   : > { %693 = vsyncadd (!%p477_p11), %s328_s24, 4294967168  ;;  %s26_s17 = sadd.s32 1, %s716_s17   ;;  %s1016_s12 = smov %s700_s13 }
  0xa3   : > { %p23_p3 = scmp.ge.s32.totalorder %s26_s17, 4   ;;  %s1017_s13 = smov %s704_s14 }
  0xa4   : > { %s1018_s14 = smov %s798_s26  ;;  %s1019_s15 = smov %s712_s16 }
  0xa5   : > { %s1020_s16 = smov %s1022_s20  ;;  %25 = sbr.rel (!%p23_p3) target bundleno = 10 (0xa), region = 107 }
  0xac   :  { %333 = vsyncpa [#allocation3], 1 }
  0xad   :  { %335 = vsyncpa [#allocation3 + $0x1], 1 }
  0xae   :  { %336 = vsyncpa [#allocation6], 1 }
  0xaf   :  { %338 = vsyncpa [#allocation6 + $0x1], 1 }
  0xb0   :  { %339 = vsyncpa [#allocation4], 1 }
  0xb1   :  { %341 = vsyncpa [#allocation4 + $0x1], 1 }
  0xb2   :  { %342 = vsyncpa [#allocation9], 1 }
  0xb3   :  { %344 = vsyncpa [#allocation9 + $0x1], 1 }

</bundles_post_ra>
